<compile_context>
chip_gen: v5e
topology: v5e:2x2
jax: 0.10.0
libtpu: 0.0.40
codegen_flags: <defaults>
</compile_context>

<pallas_src>
import functools

import numpy as np
import jax
import jax.numpy as jnp
from jax.experimental import pallas as pl
from jax.experimental.pallas import tpu as pltpu


def _round_up(a, b):
    return (a + b - 1) // b * b


def _leaky_relu(x, slope=0.2):
    return jnp.where(x > 0, x, slope * x)


def delu_kernel(
    t_real, t_pad,                                   # static ints (bound via partial)
    x_ref, halo_ref,                                 # activations (bf16)
    wf_ref, bf_ref,                                  # fusion Conv1d(C, C, 1)
    wc1_ref, bc1_ref,                                # classifier Conv1d(C, C, 3) -> (3, C, C)
    wc2_ref, bc2_ref,                                # classifier Conv1d(C, NC_PAD, 1)
    wa_ref, ba_ref,                                  # fused attention stand-in (C, 2)
    nfeat_ref, cas_ref,                              # outputs (f32)
):
    t_idx = pl.program_id(1)
    t_tile = x_ref.shape[1]
    nc_pad = cas_ref.shape[-1]
    f32 = jnp.float32
    bf16 = jnp.bfloat16

    x = x_ref[0]                  # (Tt, C)  bf16  (rgb = x[:, :C//2], flow = x[:, C//2:])
    halo = halo_ref[0, 0]         # (2, C)   bf16  rows: [tile_start - 1, tile_end]

    # ---- attention branch (stand-in AWM): one fused (C, 2) matmul + sigmoid ----
    # TODO(synk): replace with the real AWM module if its definition is available.
    atn2 = jax.nn.sigmoid(
        jnp.dot(x, wa_ref[...], preferred_element_type=f32) + ba_ref[...])   # (Tt, 2)
    v_atn = atn2[:, 0:1]
    f_atn = atn2[:, 1:2]
    x_atn = 0.5 * (v_atn + f_atn)

    # ---- fusion: Conv1d(C, C, 1) + LeakyReLU(0.2); Dropout == identity (eval) ----
    def fuse(inp_bf16):
        return _leaky_relu(
            jnp.dot(inp_bf16, wf_ref[...], preferred_element_type=f32) + bf_ref[...])

    nf = fuse(x)                  # (Tt, C) f32
    halo_nf = fuse(halo)          # (2,  C) f32   (recomputed neighbour rows, ~2/Tt extra)

    # zero rows past the real sequence length (only emitted when T was padded)
    if t_pad != t_real:
        grow = t_idx * t_tile + jax.lax.broadcasted_iota(jnp.int32, (t_tile, 1), 0)
        nf = jnp.where(grow < t_real, nf, 0.0)

    # conv zero-padding of nf at the global sequence boundaries
    prev_row = jnp.where(t_idx > 0, halo_nf[0:1, :], 0.0)                      # nf[t0 - 1]
    nxt_row = jnp.where((t_idx + 1) * t_tile < t_real, halo_nf[1:2, :], 0.0)   # nf[t0 + Tt]

    nf_b = nf.astype(bf16)
    prev = jnp.concatenate([prev_row.astype(bf16), nf_b[:-1, :]], axis=0)      # nf[t - 1]
    nxt = jnp.concatenate([nf_b[1:, :], nxt_row.astype(bf16)], axis=0)         # nf[t + 1]

    # ---- classifier: Conv1d(C, C, 3, pad=1) + LeakyReLU + Conv1d(C, NC_PAD, 1) ----
    h = (jnp.dot(prev, wc1_ref[0], preferred_element_type=f32)
         + jnp.dot(nf_b, wc1_ref[1], preferred_element_type=f32)
         + jnp.dot(nxt, wc1_ref[2], preferred_element_type=f32)
         + bc1_ref[...])
    h = _leaky_relu(h)
    cas = jnp.dot(h.astype(bf16), wc2_ref[...], preferred_element_type=f32) + bc2_ref[...]

    # ---- pack the attention scalars into the zero-padded tail lanes of cas ----
    # wc2/bc2 pad columns are exactly zero, so a plain add writes [v, f, x] there.
    lane = jax.lax.broadcasted_iota(jnp.int32, (t_tile, nc_pad), 1)
    atn_add = jnp.where(lane == nc_pad - 3, v_atn,
                        jnp.where(lane == nc_pad - 2, f_atn,
                                  jnp.where(lane == nc_pad - 1, x_atn, 0.0)))

    # ---- stores: two lane-dense slabs (Tt, C) and (Tt, NC_PAD=128k) ----
    nfeat_ref[0] = nf.astype(nfeat_ref.dtype)
    cas_ref[0] = (cas + atn_add).astype(cas_ref.dtype)


def delu_forward(inputs, params, n_class, *, t_tile=256):
    """inputs: (B, T, n_feature) float32 — mirrors DELU.forward's call signature."""
    B, T, C = inputs.shape
    NC1 = n_class + 1
    NC_PAD = params["wc2"].shape[-1]
    assert NC_PAD >= NC1 + 3, "need 3 spare lanes in the classifier pad for attention"
    bf16 = jnp.bfloat16

    # ---------------- T tiling (x is never duplicated; halos are 2 rows/tile) ----
    tt = min(_round_up(t_tile, 8), _round_up(T, 8))
    t_pad = _round_up(T, tt)
    n_t = t_pad // tt

    x = inputs.astype(bf16)
    if t_pad != T:
        x = jnp.pad(x, ((0, 0), (0, t_pad - T), (0, 0)))

    prev_idx = np.array([max(k * tt - 1, 0) for k in range(n_t)], dtype=np.int32)
    next_idx = np.array([min((k + 1) * tt, t_pad - 1) for k in range(n_t)], dtype=np.int32)
    halo = jnp.stack([x[:, prev_idx, :], x[:, next_idx, :]], axis=2)   # (B, nT, 2, C)

    def const_spec(shape):
        n = len(shape)
        return pl.BlockSpec(shape, lambda b, t, _n=n: (0,) * _n)

    grid_spec = pltpu.PrefetchScalarGridSpec(
        num_scalar_prefetch=0,
        grid=(B, n_t),
        in_specs=[
            pl.BlockSpec((1, tt, C), lambda b, t: (b, t, 0)),
            pl.BlockSpec((1, 1, 2, C), lambda b, t: (b, t, 0, 0)),
            const_spec((C, C)), const_spec((1, C)),
            const_spec((3, C, C)), const_spec((1, C)),
            const_spec((C, NC_PAD)), const_spec((1, NC_PAD)),
            const_spec((C, 2)), const_spec((1, 2)),
        ],
        out_specs=[
            pl.BlockSpec((1, tt, C), lambda b, t: (b, t, 0)),
            pl.BlockSpec((1, tt, NC_PAD), lambda b, t: (b, t, 0)),
        ],
    )

    out_shapes = (
        jax.ShapeDtypeStruct((B, t_pad, C), jnp.float32),        # nfeat
        jax.ShapeDtypeStruct((B, t_pad, NC_PAD), jnp.float32),   # cas + packed attn lanes
    )

    # ----- VMEM budget + cost hints -----
    w_bytes = ((C * C) + (3 * C * C) + (C * NC_PAD) + (C * 2)) * 2 \
              + (2 * C + NC_PAD + 2) * 4
    in_blk = (tt * C + 2 * C) * 2
    out_blk = tt * (C + NC_PAD) * 4
    vmem_limit = int(min(max(2 * w_bytes + 2 * (in_blk + out_blk) + (8 << 20),
                             32 << 20), 64 << 20))

    cost = pl.CostEstimate(
        flops=2 * B * t_pad * C * (4 * C + NC_PAD + 2),
        transcendentals=2 * B * t_pad,
        bytes_accessed=int((x.size + halo.size) * 2 + w_bytes
                           + B * t_pad * (C + NC_PAD) * 4),
    )

    nfeat, cas_pad = pl.pallas_call(
        functools.partial(delu_kernel, T, t_pad),
        out_shape=out_shapes,
        grid_spec=grid_spec,
        compiler_params=pltpu.CompilerParams(
            dimension_semantics=("parallel", "parallel"),
            vmem_limit_bytes=vmem_limit,
        ),
        cost_estimate=cost,
    )(
        x, halo,
        params["wf"], params["bf"],
        params["wc1"], params["bc1"],
        params["wc2"], params["bc2"],
        params["w_atn"], params["b_atn"],
    )

    return {
        "feat": nfeat[:, :T, :],                       # == nfeat.transpose(-1, -2) in PyTorch
        "cas": cas_pad[:, :T, :NC1],                   # (B, T, n_class + 1)
        "attn": cas_pad[:, :T, NC_PAD - 1:NC_PAD],     # (B, T, 1)
        "v_atn": cas_pad[:, :T, NC_PAD - 3:NC_PAD - 2],
        "f_atn": cas_pad[:, :T, NC_PAD - 2:NC_PAD - 1],
        "extra_loss": 0.0,                             # stand-in Attn: no auxiliary loss
    }


# ------------------------------ pure-JAX reference ------------------------------
def delu_forward_ref(inputs, params, n_class):
    """Same dtype policy as the kernel: bf16 matmul operands, f32 accumulation."""
    NC1 = n_class + 1
    bf16 = jnp.bfloat16
    x = inputs.astype(bf16)

    def dot(a, w):
        return jnp.einsum("btk,kn->btn", a, w, preferred_element_type=jnp.float32)

    atn2 = jax.nn.sigmoid(dot(x, params["w_atn"]) + params["b_atn"])
    v_atn, f_atn = atn2[..., 0:1], atn2[..., 1:2]
    attn = 0.5 * (v_atn + f_atn)

    nf = _leaky_relu(dot(x, params["wf"]) + params["bf"])
    nfb = nf.astype(bf16)
    pad = jnp.pad(nfb, ((0, 0), (1, 1), (0, 0)))
    h = _leaky_relu(dot(pad[:, :-2], params["wc1"][0])
                    + dot(pad[:, 1:-1], params["wc1"][1])
                    + dot(pad[:, 2:], params["wc1"][2])
                    + params["bc1"])
    cas = dot(h.astype(bf16), params["wc2"]) + params["bc2"]
    return {"feat": nf, "cas": cas[..., :NC1],
            "attn": attn, "v_atn": v_atn, "f_atn": f_atn}


def make_params(key, n_feature, n_class):
    C = n_feature
    DH = C // 2
    NC1 = n_class + 1
    NC_PAD = max(128, _round_up(NC1 + 3, 128))   # keep 3 spare lanes for packed attention
    ks = jax.random.split(key, 9)

    def ku(k, shape, fan_in):
        bound = (6.0 / fan_in) ** 0.5
        return jax.random.uniform(k, shape, jnp.float32, -bound, bound)

    wf = ku(ks[0], (C, C), C)
    wc1 = ku(ks[1], (3, C, C), 3 * C)
    wc2 = ku(ks[2], (C, NC1), C)
    wav = ku(ks[3], (DH, 1), DH)
    waf = ku(ks[4], (DH, 1), DH)

    # PyTorch zero-fills biases; use small nonzero values here to exercise the bias path.
    bf = 0.05 * jax.random.normal(ks[5], (1, C), jnp.float32)
    bc1 = 0.05 * jax.random.normal(ks[6], (1, C), jnp.float32)
    bc2 = jnp.zeros((1, NC_PAD), jnp.float32).at[:, :NC1].set(
        0.05 * jax.random.normal(ks[7], (1, NC1), jnp.float32))
    b_atn = 0.05 * jax.random.normal(ks[8], (1, 2), jnp.float32)

    # lane-dense padded classifier head (zero columns beyond NC1)
    wc2_pad = jnp.zeros((C, NC_PAD), jnp.float32).at[:, :NC1].set(wc2)
    # the two attention 1x1 convs fused into one block-diagonal (C, 2) weight
    w_atn = jnp.zeros((C, 2), jnp.float32).at[:DH, 0:1].set(wav).at[DH:, 1:2].set(waf)

    bf16 = jnp.bfloat16
    return {
        "wf": wf.astype(bf16), "bf": bf,
        "wc1": wc1.astype(bf16), "bc1": bc1,
        "wc2": wc2_pad.astype(bf16), "bc2": bc2,
        "w_atn": w_atn.astype(bf16), "b_atn": b_atn,
    }


if __name__ == "__main__":
    B, T = 2, 40
    n_feature = 128     # small stand-in for the real 2048 (= 2 x 1024 modality features)
    n_class = 4

    key = jax.random.PRNGKey(0)
    k_x, k_p = jax.random.split(key)
    x = jax.random.normal(k_x, (B, T, n_feature), jnp.float32)
    params = make_params(k_p, n_feature, n_class)

    # t_tile=16 with T=40 exercises multi-tile halos AND the tail-padding mask.
    out = jax.block_until_ready(delu_forward(x, params, n_class, t_tile=16))
    ref = delu_forward_ref(x, params, n_class)

    for name in ("feat", "cas", "attn", "v_atn", "f_atn"):
        assert out[name].shape == ref[name].shape, (name, out[name].shape, ref[name].shape)
        assert jnp.allclose(out[name], ref[name], atol=2e-2, rtol=2e-2), name

    print("KERNEL_OK")
</pallas_src>

<mosaic_0001>
module attributes {stable_mosaic.version = 11 : i64} {
  func.func @delu_kernel(%arg0: i32, %arg1: i32, %arg2: memref<1x16x128xbf16, #tpu.memory_space<vmem>>, %arg3: memref<1x1x2x128xbf16, #tpu.memory_space<vmem>>, %arg4: memref<128x128xbf16, #tpu.memory_space<vmem>>, %arg5: memref<1x128xf32, #tpu.memory_space<vmem>>, %arg6: memref<3x128x128xbf16, #tpu.memory_space<vmem>>, %arg7: memref<1x128xf32, #tpu.memory_space<vmem>>, %arg8: memref<128x128xbf16, #tpu.memory_space<vmem>>, %arg9: memref<1x128xf32, #tpu.memory_space<vmem>>, %arg10: memref<128x2xbf16, #tpu.memory_space<vmem>>, %arg11: memref<1x2xf32, #tpu.memory_space<vmem>>, %arg12: memref<1x16x128xf32, #tpu.memory_space<vmem>>, %arg13: memref<1x16x128xf32, #tpu.memory_space<vmem>>) attributes {dimension_semantics = [#tpu.dimension_semantics<parallel>, #tpu.dimension_semantics<parallel>], iteration_bounds = array<i64: 2, 3>, scalar_prefetch = 0 : i64, scratch_operands = 0 : i64, tpu.core_type = #tpu.core_type<tc>, window_params = [{transform_indices = @transform_0, window_bounds = array<i64: 1, 16, 128>}, {transform_indices = @transform_1, window_bounds = array<i64: 1, 1, 2, 128>}, {pipeline_mode = #tpu.pipeline_mode<synchronous>, transform_indices = @transform_2, window_bounds = array<i64: 128, 128>}, {pipeline_mode = #tpu.pipeline_mode<synchronous>, transform_indices = @transform_3, window_bounds = array<i64: 1, 128>}, {pipeline_mode = #tpu.pipeline_mode<synchronous>, transform_indices = @transform_4, window_bounds = array<i64: 3, 128, 128>}, {pipeline_mode = #tpu.pipeline_mode<synchronous>, transform_indices = @transform_5, window_bounds = array<i64: 1, 128>}, {pipeline_mode = #tpu.pipeline_mode<synchronous>, transform_indices = @transform_6, window_bounds = array<i64: 128, 128>}, {pipeline_mode = #tpu.pipeline_mode<synchronous>, transform_indices = @transform_7, window_bounds = array<i64: 1, 128>}, {pipeline_mode = #tpu.pipeline_mode<synchronous>, transform_indices = @transform_8, window_bounds = array<i64: 128, 2>}, {pipeline_mode = #tpu.pipeline_mode<synchronous>, transform_indices = @transform_9, window_bounds = array<i64: 1, 2>}, {transform_indices = @transform_10, window_bounds = array<i64: 1, 16, 128>}, {transform_indices = @transform_11, window_bounds = array<i64: 1, 16, 128>}]} {
    %c0 = arith.constant 0 : index
    %c0_0 = arith.constant 0 : index
    %c0_1 = arith.constant 0 : index
    %0 = vector.load %arg2[%c0, %c0_0, %c0_1] : memref<1x16x128xbf16, #tpu.memory_space<vmem>>, vector<1x16x128xbf16>
    %1 = vector.shape_cast %0 : vector<1x16x128xbf16> to vector<16x128xbf16>
    %c0_2 = arith.constant 0 : index
    %c0_3 = arith.constant 0 : index
    %c0_4 = arith.constant 0 : index
    %c0_5 = arith.constant 0 : index
    %2 = vector.load %arg3[%c0_2, %c0_3, %c0_4, %c0_5] : memref<1x1x2x128xbf16, #tpu.memory_space<vmem>>, vector<1x1x2x128xbf16>
    %3 = vector.shape_cast %2 : vector<1x1x2x128xbf16> to vector<2x128xbf16>
    %c0_6 = arith.constant 0 : index
    %c0_7 = arith.constant 0 : index
    %4 = vector.load %arg10[%c0_6, %c0_7] : memref<128x2xbf16, #tpu.memory_space<vmem>>, vector<128x2xbf16>
    %cst = arith.constant dense<0.000000e+00> : vector<16x2xf32>
    %5 = tpu.matmul %1, %4, %cst {dimension_numbers = #tpu.dot_dimension_numbers<[1], [0], [0], [1], [0, 0, 1, 1], [], []>} : vector<16x128xbf16>, vector<128x2xbf16>, vector<16x2xf32> -> vector<16x2xf32>
    %c0_8 = arith.constant 0 : index
    %c0_9 = arith.constant 0 : index
    %6 = vector.load %arg11[%c0_8, %c0_9] : memref<1x2xf32, #tpu.memory_space<vmem>>, vector<1x2xf32>
    %7 = vector.broadcast %6 : vector<1x2xf32> to vector<16x2xf32>
    %8 = arith.addf %5, %7 : vector<16x2xf32>
    %9 = arith.negf %8 : vector<16x2xf32>
    %10 = math.exp %9 : vector<16x2xf32>
    %cst_10 = arith.constant 1.000000e+00 : f32
    %11 = vector.broadcast %cst_10 : f32 to vector<16x2xf32>
    %12 = arith.addf %11, %10 : vector<16x2xf32>
    %13 = arith.divf %11, %12 : vector<16x2xf32>
    %14 = vector.extract_strided_slice %13 {offsets = [0, 0], sizes = [16, 1], strides = [1, 1]} : vector<16x2xf32> to vector<16x1xf32>
    %15 = vector.extract_strided_slice %13 {offsets = [0, 1], sizes = [16, 1], strides = [1, 1]} : vector<16x2xf32> to vector<16x1xf32>
    %16 = arith.addf %14, %15 : vector<16x1xf32>
    %cst_11 = arith.constant 5.000000e-01 : f32
    %17 = vector.broadcast %cst_11 : f32 to vector<16x1xf32>
    %18 = arith.mulf %17, %16 : vector<16x1xf32>
    %c0_12 = arith.constant 0 : index
    %c0_13 = arith.constant 0 : index
    %19 = vector.load %arg4[%c0_12, %c0_13] : memref<128x128xbf16, #tpu.memory_space<vmem>>, vector<128x128xbf16>
    %cst_14 = arith.constant dense<0.000000e+00> : vector<16x128xf32>
    %20 = tpu.matmul %1, %19, %cst_14 {dimension_numbers = #tpu.dot_dimension_numbers<[1], [0], [0], [1], [0, 0, 1, 1], [], []>} : vector<16x128xbf16>, vector<128x128xbf16>, vector<16x128xf32> -> vector<16x128xf32>
    %c0_15 = arith.constant 0 : index
    %c0_16 = arith.constant 0 : index
    %21 = vector.load %arg5[%c0_15, %c0_16] : memref<1x128xf32, #tpu.memory_space<vmem>>, vector<1x128xf32>
    %22 = vector.broadcast %21 : vector<1x128xf32> to vector<16x128xf32>
    %23 = arith.addf %20, %22 : vector<16x128xf32>
    %cst_17 = arith.constant 0.000000e+00 : f32
    %24 = vector.broadcast %cst_17 : f32 to vector<16x128xf32>
    %25 = arith.cmpf ogt, %23, %24 : vector<16x128xf32>
    %cst_18 = arith.constant 2.000000e-01 : f32
    %26 = vector.broadcast %cst_18 : f32 to vector<16x128xf32>
    %27 = arith.mulf %26, %23 : vector<16x128xf32>
    %28 = arith.select %25, %23, %27 : vector<16x128xi1>, vector<16x128xf32>
    %c0_19 = arith.constant 0 : index
    %c0_20 = arith.constant 0 : index
    %29 = vector.load %arg4[%c0_19, %c0_20] : memref<128x128xbf16, #tpu.memory_space<vmem>>, vector<128x128xbf16>
    %cst_21 = arith.constant dense<0.000000e+00> : vector<2x128xf32>
    %30 = tpu.matmul %3, %29, %cst_21 {dimension_numbers = #tpu.dot_dimension_numbers<[1], [0], [0], [1], [0, 0, 1, 1], [], []>} : vector<2x128xbf16>, vector<128x128xbf16>, vector<2x128xf32> -> vector<2x128xf32>
    %c0_22 = arith.constant 0 : index
    %c0_23 = arith.constant 0 : index
    %31 = vector.load %arg5[%c0_22, %c0_23] : memref<1x128xf32, #tpu.memory_space<vmem>>, vector<1x128xf32>
    %32 = vector.broadcast %31 : vector<1x128xf32> to vector<2x128xf32>
    %33 = arith.addf %30, %32 : vector<2x128xf32>
    %cst_24 = arith.constant 0.000000e+00 : f32
    %34 = vector.broadcast %cst_24 : f32 to vector<2x128xf32>
    %35 = arith.cmpf ogt, %33, %34 : vector<2x128xf32>
    %cst_25 = arith.constant 2.000000e-01 : f32
    %36 = vector.broadcast %cst_25 : f32 to vector<2x128xf32>
    %37 = arith.mulf %36, %33 : vector<2x128xf32>
    %38 = arith.select %35, %33, %37 : vector<2x128xi1>, vector<2x128xf32>
    %c16_i32 = arith.constant 16 : i32
    %39 = arith.muli %arg1, %c16_i32 : i32
    %40 = tpu.iota {dimensions = array<i32: 0>} : vector<16x1xi32>
    %41 = vector.broadcast %39 : i32 to vector<16x1xi32>
    %42 = arith.addi %41, %40 : vector<16x1xi32>
    %c40_i32 = arith.constant 40 : i32
    %43 = vector.broadcast %c40_i32 : i32 to vector<16x1xi32>
    %44 = arith.cmpi slt, %42, %43 : vector<16x1xi32>
    %cst_26 = arith.constant 0.000000e+00 : f32
    %45 = vector.shape_cast %44 : vector<16x1xi1> to vector<16x1xi1>
    %46 = vector.broadcast %45 : vector<16x1xi1> to vector<16x128xi1>
    %47 = vector.broadcast %cst_26 : f32 to vector<16x128xf32>
    %48 = arith.select %46, %28, %47 : vector<16x128xi1>, vector<16x128xf32>
    %c0_i32 = arith.constant 0 : i32
    %49 = arith.cmpi sgt, %arg1, %c0_i32 : i32
    %50 = vector.extract_strided_slice %38 {offsets = [0, 0], sizes = [1, 128], strides = [1, 1]} : vector<2x128xf32> to vector<1x128xf32>
    %cst_27 = arith.constant 0.000000e+00 : f32
    %51 = vector.broadcast %cst_27 : f32 to vector<1x128xf32>
    %52 = arith.select %49, %50, %51 : vector<1x128xf32>
    %c1_i32 = arith.constant 1 : i32
    %53 = arith.addi %arg1, %c1_i32 : i32
    %c16_i32_28 = arith.constant 16 : i32
    %54 = arith.muli %53, %c16_i32_28 : i32
    %c40_i32_29 = arith.constant 40 : i32
    %55 = arith.cmpi slt, %54, %c40_i32_29 : i32
    %56 = vector.extract_strided_slice %38 {offsets = [1, 0], sizes = [1, 128], strides = [1, 1]} : vector<2x128xf32> to vector<1x128xf32>
    %cst_30 = arith.constant 0.000000e+00 : f32
    %57 = vector.broadcast %cst_30 : f32 to vector<1x128xf32>
    %58 = arith.select %55, %56, %57 : vector<1x128xf32>
    %59 = arith.truncf %48 : vector<16x128xf32> to vector<16x128xbf16>
    %60 = arith.truncf %52 : vector<1x128xf32> to vector<1x128xbf16>
    %61 = vector.extract_strided_slice %59 {offsets = [0, 0], sizes = [15, 128], strides = [1, 1]} : vector<16x128xbf16> to vector<15x128xbf16>
    %62 = tpu.concatenate %60, %61 in 0 : vector<1x128xbf16>, vector<15x128xbf16> -> vector<16x128xbf16>
    %63 = vector.extract_strided_slice %59 {offsets = [1, 0], sizes = [15, 128], strides = [1, 1]} : vector<16x128xbf16> to vector<15x128xbf16>
    %64 = arith.truncf %58 : vector<1x128xf32> to vector<1x128xbf16>
    %65 = tpu.concatenate %63, %64 in 0 : vector<15x128xbf16>, vector<1x128xbf16> -> vector<16x128xbf16>
    %c0_31 = arith.constant 0 : index
    %c0_32 = arith.constant 0 : index
    %c0_33 = arith.constant 0 : index
    %66 = vector.load %arg6[%c0_31, %c0_32, %c0_33] : memref<3x128x128xbf16, #tpu.memory_space<vmem>>, vector<1x128x128xbf16>
    %67 = vector.shape_cast %66 : vector<1x128x128xbf16> to vector<128x128xbf16>
    %cst_34 = arith.constant dense<0.000000e+00> : vector<16x128xf32>
    %68 = tpu.matmul %62, %67, %cst_34 {dimension_numbers = #tpu.dot_dimension_numbers<[1], [0], [0], [1], [0, 0, 1, 1], [], []>} : vector<16x128xbf16>, vector<128x128xbf16>, vector<16x128xf32> -> vector<16x128xf32>
    %c1 = arith.constant 1 : index
    %c0_35 = arith.constant 0 : index
    %c0_36 = arith.constant 0 : index
    %69 = vector.load %arg6[%c1, %c0_35, %c0_36] : memref<3x128x128xbf16, #tpu.memory_space<vmem>>, vector<1x128x128xbf16>
    %70 = vector.shape_cast %69 : vector<1x128x128xbf16> to vector<128x128xbf16>
    %cst_37 = arith.constant dense<0.000000e+00> : vector<16x128xf32>
    %71 = tpu.matmul %59, %70, %cst_37 {dimension_numbers = #tpu.dot_dimension_numbers<[1], [0], [0], [1], [0, 0, 1, 1], [], []>} : vector<16x128xbf16>, vector<128x128xbf16>, vector<16x128xf32> -> vector<16x128xf32>
    %72 = arith.addf %68, %71 : vector<16x128xf32>
    %c2 = arith.constant 2 : index
    %c0_38 = arith.constant 0 : index
    %c0_39 = arith.constant 0 : index
    %73 = vector.load %arg6[%c2, %c0_38, %c0_39] : memref<3x128x128xbf16, #tpu.memory_space<vmem>>, vector<1x128x128xbf16>
    %74 = vector.shape_cast %73 : vector<1x128x128xbf16> to vector<128x128xbf16>
    %cst_40 = arith.constant dense<0.000000e+00> : vector<16x128xf32>
    %75 = tpu.matmul %65, %74, %cst_40 {dimension_numbers = #tpu.dot_dimension_numbers<[1], [0], [0], [1], [0, 0, 1, 1], [], []>} : vector<16x128xbf16>, vector<128x128xbf16>, vector<16x128xf32> -> vector<16x128xf32>
    %76 = arith.addf %72, %75 : vector<16x128xf32>
    %c0_41 = arith.constant 0 : index
    %c0_42 = arith.constant 0 : index
    %77 = vector.load %arg7[%c0_41, %c0_42] : memref<1x128xf32, #tpu.memory_space<vmem>>, vector<1x128xf32>
    %78 = vector.broadcast %77 : vector<1x128xf32> to vector<16x128xf32>
    %79 = arith.addf %76, %78 : vector<16x128xf32>
    %cst_43 = arith.constant 0.000000e+00 : f32
    %80 = vector.broadcast %cst_43 : f32 to vector<16x128xf32>
    %81 = arith.cmpf ogt, %79, %80 : vector<16x128xf32>
    %cst_44 = arith.constant 2.000000e-01 : f32
    %82 = vector.broadcast %cst_44 : f32 to vector<16x128xf32>
    %83 = arith.mulf %82, %79 : vector<16x128xf32>
    %84 = arith.select %81, %79, %83 : vector<16x128xi1>, vector<16x128xf32>
    %85 = arith.truncf %84 : vector<16x128xf32> to vector<16x128xbf16>
    %c0_45 = arith.constant 0 : index
    %c0_46 = arith.constant 0 : index
    %86 = vector.load %arg8[%c0_45, %c0_46] : memref<128x128xbf16, #tpu.memory_space<vmem>>, vector<128x128xbf16>
    %cst_47 = arith.constant dense<0.000000e+00> : vector<16x128xf32>
    %87 = tpu.matmul %85, %86, %cst_47 {dimension_numbers = #tpu.dot_dimension_numbers<[1], [0], [0], [1], [0, 0, 1, 1], [], []>} : vector<16x128xbf16>, vector<128x128xbf16>, vector<16x128xf32> -> vector<16x128xf32>
    %c0_48 = arith.constant 0 : index
    %c0_49 = arith.constant 0 : index
    %88 = vector.load %arg9[%c0_48, %c0_49] : memref<1x128xf32, #tpu.memory_space<vmem>>, vector<1x128xf32>
    %89 = vector.broadcast %88 : vector<1x128xf32> to vector<16x128xf32>
    %90 = arith.addf %87, %89 : vector<16x128xf32>
    %91 = tpu.iota {dimensions = array<i32: 1>} : vector<16x128xi32>
    %c125_i32 = arith.constant 125 : i32
    %92 = vector.broadcast %c125_i32 : i32 to vector<16x128xi32>
    %93 = arith.cmpi eq, %91, %92 : vector<16x128xi32>
    %c126_i32 = arith.constant 126 : i32
    %94 = vector.broadcast %c126_i32 : i32 to vector<16x128xi32>
    %95 = arith.cmpi eq, %91, %94 : vector<16x128xi32>
    %c127_i32 = arith.constant 127 : i32
    %96 = vector.broadcast %c127_i32 : i32 to vector<16x128xi32>
    %97 = arith.cmpi eq, %91, %96 : vector<16x128xi32>
    %cst_50 = arith.constant 0.000000e+00 : f32
    %98 = vector.shape_cast %18 : vector<16x1xf32> to vector<16x1xf32>
    %99 = vector.broadcast %98 : vector<16x1xf32> to vector<16x128xf32>
    %100 = vector.broadcast %cst_50 : f32 to vector<16x128xf32>
    %101 = arith.select %97, %99, %100 : vector<16x128xi1>, vector<16x128xf32>
    %102 = vector.shape_cast %15 : vector<16x1xf32> to vector<16x1xf32>
    %103 = vector.broadcast %102 : vector<16x1xf32> to vector<16x128xf32>
    %104 = arith.select %95, %103, %101 : vector<16x128xi1>, vector<16x128xf32>
    %105 = vector.shape_cast %14 : vector<16x1xf32> to vector<16x1xf32>
    %106 = vector.broadcast %105 : vector<16x1xf32> to vector<16x128xf32>
    %107 = arith.select %93, %106, %104 : vector<16x128xi1>, vector<16x128xf32>
    %c0_51 = arith.constant 0 : index
    %c0_52 = arith.constant 0 : index
    %c0_53 = arith.constant 0 : index
    %108 = vector.load %arg12[%c0_51, %c0_52, %c0_53] : memref<1x16x128xf32, #tpu.memory_space<vmem>>, vector<1x16x128xf32>
    %109 = vector.shape_cast %108 : vector<1x16x128xf32> to vector<16x128xf32>
    %110 = vector.shape_cast %48 : vector<16x128xf32> to vector<1x16x128xf32>
    tpu.vector_store %arg12[%c0_51, %c0_52, %c0_53], %110 {strides = array<i32>} : memref<1x16x128xf32, #tpu.memory_space<vmem>>, vector<1x16x128xf32>,
    %111 = arith.addf %90, %107 : vector<16x128xf32>
    %c0_54 = arith.constant 0 : index
    %c0_55 = arith.constant 0 : index
    %c0_56 = arith.constant 0 : index
    %112 = vector.load %arg13[%c0_54, %c0_55, %c0_56] : memref<1x16x128xf32, #tpu.memory_space<vmem>>, vector<1x16x128xf32>
    %113 = vector.shape_cast %112 : vector<1x16x128xf32> to vector<16x128xf32>
    %114 = vector.shape_cast %111 : vector<16x128xf32> to vector<1x16x128xf32>
    tpu.vector_store %arg13[%c0_54, %c0_55, %c0_56], %114 {strides = array<i32>} : memref<1x16x128xf32, #tpu.memory_space<vmem>>, vector<1x16x128xf32>,
    return
  }
  func.func @transform_0(%arg0: i32, %arg1: i32) -> (i32, i32, i32) {
    %c0_i32 = arith.constant 0 : i32
    %c0_i32_0 = arith.constant 0 : i32
    return %arg0, %arg1, %c0_i32 : i32, i32, i32
  }
  func.func @transform_1(%arg0: i32, %arg1: i32) -> (i32, i32, i32, i32) {
    %c0_i32 = arith.constant 0 : i32
    %c0_i32_0 = arith.constant 0 : i32
    %c0_i32_1 = arith.constant 0 : i32
    return %arg0, %arg1, %c0_i32, %c0_i32_0 : i32, i32, i32, i32
  }
  func.func @transform_2(%arg0: i32, %arg1: i32) -> (i32, i32) {
    %c0_i32 = arith.constant 0 : i32
    %c0_i32_0 = arith.constant 0 : i32
    %c0_i32_1 = arith.constant 0 : i32
    return %c0_i32, %c0_i32_0 : i32, i32
  }
  func.func @transform_3(%arg0: i32, %arg1: i32) -> (i32, i32) {
    %c0_i32 = arith.constant 0 : i32
    %c0_i32_0 = arith.constant 0 : i32
    %c0_i32_1 = arith.constant 0 : i32
    return %c0_i32, %c0_i32_0 : i32, i32
  }
  func.func @transform_4(%arg0: i32, %arg1: i32) -> (i32, i32, i32) {
    %c0_i32 = arith.constant 0 : i32
    %c0_i32_0 = arith.constant 0 : i32
    %c0_i32_1 = arith.constant 0 : i32
    %c0_i32_2 = arith.constant 0 : i32
    return %c0_i32, %c0_i32_0, %c0_i32_1 : i32, i32, i32
  }
  func.func @transform_5(%arg0: i32, %arg1: i32) -> (i32, i32) {
    %c0_i32 = arith.constant 0 : i32
    %c0_i32_0 = arith.constant 0 : i32
    %c0_i32_1 = arith.constant 0 : i32
    return %c0_i32, %c0_i32_0 : i32, i32
  }
  func.func @transform_6(%arg0: i32, %arg1: i32) -> (i32, i32) {
    %c0_i32 = arith.constant 0 : i32
    %c0_i32_0 = arith.constant 0 : i32
    %c0_i32_1 = arith.constant 0 : i32
    return %c0_i32, %c0_i32_0 : i32, i32
  }
  func.func @transform_7(%arg0: i32, %arg1: i32) -> (i32, i32) {
    %c0_i32 = arith.constant 0 : i32
    %c0_i32_0 = arith.constant 0 : i32
    %c0_i32_1 = arith.constant 0 : i32
    return %c0_i32, %c0_i32_0 : i32, i32
  }
  func.func @transform_8(%arg0: i32, %arg1: i32) -> (i32, i32) {
    %c0_i32 = arith.constant 0 : i32
    %c0_i32_0 = arith.constant 0 : i32
    %c0_i32_1 = arith.constant 0 : i32
    return %c0_i32, %c0_i32_0 : i32, i32
  }
  func.func @transform_9(%arg0: i32, %arg1: i32) -> (i32, i32) {
    %c0_i32 = arith.constant 0 : i32
    %c0_i32_0 = arith.constant 0 : i32
    %c0_i32_1 = arith.constant 0 : i32
    return %c0_i32, %c0_i32_0 : i32, i32
  }
  func.func @transform_10(%arg0: i32, %arg1: i32) -> (i32, i32, i32) {
    %c0_i32 = arith.constant 0 : i32
    %c0_i32_0 = arith.constant 0 : i32
    return %arg0, %arg1, %c0_i32 : i32, i32, i32
  }
  func.func @transform_11(%arg0: i32, %arg1: i32) -> (i32, i32, i32) {
    %c0_i32 = arith.constant 0 : i32
    %c0_i32_0 = arith.constant 0 : i32
    return %arg0, %arg1, %c0_i32 : i32, i32, i32
  }
}

</mosaic_0001>

<bundles_post_ra>
// kernel: tpu_custom_call.1
= control target key start
LH: loop header
LB: loop body
LE: loop exit
PB: predicated region body
PF: predicated region fallthrough
CT: control target
= control target key end

     0   :  { %s2459_s0 = inlined_call_operand.hbm [shape: bf16[2,48,128], index: 0, kind: input, shape index: {}]   ;;  %s2460_s1 = inlined_call_operand.hbm [shape: bf16[2,3,2,128], index: 1, kind: input, shape index: {}]   ;;  %s2461_s2 = inlined_call_operand.vmem [shape: bf16[128,128], index: 2, kind: input, shape index: {}]   ;;  %s2462_s3 = inlined_call_operand.vmem [shape: f32[1,128], index: 3, kind: input, shape index: {}]   ;;  %s2463_s4 = inlined_call_operand.hbm [shape: bf16[3,128,128], index: 4, kind: input, shape index: {}]   ;;  %s2464_s5 = inlined_call_operand.vmem [shape: f32[1,128], index: 5, kind: input, shape index: {}]   ;;  %s2465_s6 = inlined_call_operand.hbm [shape: bf16[128,128], index: 6, kind: input, shape index: {}]   ;;  %s2466_s7 = inlined_call_operand.vmem [shape: f32[1,128], index: 7, kind: input, shape index: {}]   ;;  %s2467_s8 = inlined_call_operand.vmem [shape: bf16[128,2], index: 8, kind: input, shape index: {}]   ;;  %s2468_s9 = inlined_call_operand.vmem [shape: f32[1,2], index: 9, kind: input, shape index: {}]   ;;  %s2469_s10 = inlined_call_operand.hbm [shape: f32[2,48,128], index: 10, kind: output, shape index: {0}]   ;;  %s2470_s11 = inlined_call_operand.hbm [shape: f32[2,48,128], index: 11, kind: output, shape index: {1}]  }
   0x1   :  { %2481 = sst [smem:[#allocation26_spill]] %s2462_s3 }
   0x2   :  { %2482 = sst [smem:[#allocation27_spill]] %s2463_s4 }
   0x3   :  { %2483 = sst [smem:[#allocation28_spill]] %s2464_s5 }
   0x4   :  { %2484 = sst [smem:[#allocation29_spill]] %s2465_s6 }
   0x5   :  { %2485 = sst [smem:[#allocation30_spill]] %s2466_s7 }
   0x6   :  { %2486 = sst [smem:[#allocation31_spill]] %s2468_s9 }
   0x7   :  { %2487 = sst [smem:[#allocation32_spill]] %s2469_s10 }
   0x8   :  { %2488 = sst [smem:[#allocation33_spill]] %s2470_s11 }
   0x9   :  { %17 = vsyncpa [#allocation3], 0 }
   0xa   :  { %19 = vsyncpa [#allocation3 + $0x1], 0 }
   0xb   :  { %20 = vsyncpa [#allocation6], 0 }
   0xc   :  { %22 = vsyncpa [#allocation6 + $0x1], 0 }
   0xd   :  { %23 = vsyncpa [#allocation9], 0 }
   0xe   :  { %24 = vsyncpa [#allocation4], 0 }
   0xf   :  { %26 = vsyncpa [#allocation4 + $0x1], 0 }
  0x10   :  { %27 = vsyncpa [#allocation12], 0 }
  0x11   :  { %29 = vsyncpa [#allocation12 + $0x1], 0  ;;  %s2145_s17 = smov 0   ;;  %s2147_s18 = smov 0  }
  0x12   :  { %s2149_s19 = smov 0   ;;  %s2151_s20 = smov 0  }
  0x13   :  { %s2153_s21 = smov 0   ;;  %s2155_s22 = smov 0  }
  0x14   :  { %s2157_s23 = smov 0   ;;  %s2159_s24 = smov 0  }
  0x15 LB: > { %2489 = sst [smem:[#allocation19_spill]] %s2046_s17  ;;  %s2186_s25 = sadd.s32 4294967295, %s2074_s24   ;;  %s2074_s24 = sphi %s2159_s24, %s35_s24   ;;  %s2070_s23 = sphi %s2157_s23, %s2524_s23   ;;  %s2066_s22 = sphi %s2155_s22, %s2523_s22   ;;  %s2062_s21 = sphi %s2153_s21, %s2522_s21   ;;  %s2058_s20 = sphi %s2151_s20, %s2521_s20   ;;  %s2054_s19 = sphi %s2149_s19, %s2520_s19   ;;  %s2050_s18 = sphi %s2147_s18, %s2519_s18   ;;  %s2046_s17 = sphi %s2145_s17, %s2518_s17  }
  0x16   : > { %2490 = sst [smem:[#allocation20_spill]] %s2062_s21  ;;  %s1404_s26 = sadd.s32 4294967294, %s2074_s24  }
  0x17   : > { %p69_p0 = scmp.ne.s32.totalorder %s2050_s18, %s2046_s17  ;;  %p70_p1 = scmp.eq.s32.totalorder %s2186_s25, 0 }
  0x18   : > { %p297_p2 = scmp.eq.s32.totalorder %s1404_s26, 5  ;;  %p1405_p4 = scmp.ge.s32.totalorder %s2074_s24, 1 }
  0x19   : > { %p2194_p3 = por %p70_p1, %p69_p0  ;;  %p332_p6 = scmp.lt.s32.totalorder %s2074_s24, 7 }
  0x1a   : > { %p2199_p5 = por %p297_p2, %p69_p0  ;;  %s2494_s4 = sld [smem:[#allocation27_spill]] }
  0x1b   : > { %p2207_p7 = pnand %p1405_p4, %p332_p6  ;;  %s2076_s14 = smov [#allocation7]  }
  0x1c   : > { %s2492_s28 = scalar_select %p2199_p5, 1, 0 }
  0x1d   : > { %p1697_p8 = pneg %p2207_p7  ;;  %s351_s15 = sshll.u32 %s2076_s14, 4  ;;  %s352_s15 = int_to_ptr.vmem [resolvable:$true] %s351_s15 }
  0x1e   : > { %2493 = sst [smem:[#allocation21_spill]] %s2492_s28  ;;  %s2472_s30 = smov 64  }
  0x1f   : > { %p1698_p9 = pnand %p1697_p8, %p70_p1  ;;  %s2496_s6 = sld [smem:[#allocation29_spill]] }
  0x20   : > { %s349_s12 = sshll.u32 %s2494_s4, 4  ;;  %s2473_s4 = smov 4   ;;  %s350_s12 = int_to_ptr.hbm [resolvable:$true] %s349_s12 }
  0x21   : > { %1700 = dma.hbm_to_vmem [thread:$0]  (!%p1698_p9), %s350_s12, 3072, %s352_s15, [#allocation6], %s2472_s30, %s2472_s30, %s2473_s4  }
  0x22   : > { %s2079_s14 = smov [#allocation8]   ;;  %p291_p10 = scmp.eq.s32.totalorder %s2186_s25, 5 }
  0x23   : > { %s368_s28 = sshll.u32 %s2079_s14, 4  ;;  %s44_s16 = sadd.s32 1, %s2066_s22  ;;  %s369_s28 = int_to_ptr.vmem [resolvable:$true] %s368_s28 }
  0x24   : > { %p45_p11 = scmp.ge.s32.totalorder %s44_s16, 3  ;;  %s47_s26 = sadd.s32 1, %s2070_s23 }
  0x25   : > { %s366_s29 = sshll.u32 %s2496_s6, 4  ;;  %p63_p12 = scmp.ne.s32.totalorder %s2054_s19, %s2050_s18  ;;  %s367_s29 = int_to_ptr.hbm [resolvable:$true] %s366_s29 }
  0x26   : > { %1703 = dma.hbm_to_vmem [thread:$0]  (!%p1698_p9), %s367_s29, 1024, %s369_s28, [#allocation9], %s2472_s30, %s2472_s30, %s2473_s4  }
  0x27   : > { %p64_p13 = scmp.eq.s32.totalorder %s2074_s24, 0  ;;  %s2526_s16 = smov (%p45_p11, %s44_s16), 0 }
  0x28   : > { %2497 = sst [smem:[#allocation22_spill]] %s2526_s16  ;;  %s2528_s26 = smov (!%p45_p11, %s47_s26), %s2070_s23 }
  0x29   : > { %s52_s12 = ssub.s32 %s2066_s22, %s2526_s16  ;;  %s56_s15 = sadd.s32 1, %s2054_s19 }
  0x2a   : > { %p49_p0 = scmp.ge.s32.totalorder %s2528_s26, 2  ;;  %p2236_p2 = por %p291_p10, %p63_p12 }
  0x2b   : > { %p65_p4 = por %p64_p13, %p63_p12  ;;  %s391_s29 = sand.u32 1, %s2054_s19  }
  0x2c   : > { %s2498_s28 = scalar_select %p2236_p2, 1, 0 }
  0x2d   : > { %s2530_s26 = smov (%p49_p0, %s2528_s26), 0  ;;  %p1720_p6 = scmp.lt.s32.totalorder %s2074_s24, 6 }
  0x2e   : > { %2499 = sst [smem:[#allocation23_spill]] %s2498_s28  ;;  %s1409_s14 = sshll.u32 %s391_s29, 3 }
  0x2f   : > { %2500 = sst [smem:[#allocation24_spill]] %s2530_s26  ;;  %s51_s30 = ssub.s32 %s2070_s23, %s2530_s26 }
  0x30   : > { %s53_s4 = sor.u32 %s52_s12, %s51_s30  ;;  %s1410_s6 = sshll.u32 %s2066_s22, 1 }
  0x31   : > { %p54_p8 = scmp.eq.s32.totalorder %s53_s4, 0  ;;  %s1677_s16 = smul.u32 6, %s2070_s23 }
  0x32   : > { %s395_s17 = scalar_lea.vmem [#allocation2], %s1409_s14  ;;  %p2248_p9 = pnand %p1720_p6, %p65_p4 }
  0x33   : > { %s405_s11 = sshll.u32 %s395_s17, 4  ;;  %s400_s28 = sadd.s32 %s1677_s16, %s1410_s6  ;;  %s406_s11 = int_to_ptr.vmem [resolvable:$true] %s405_s11 }
  0x34   : > { %s2253_s10 = scalar_select %p54_p8, %s2054_s19, %s56_s15  }
  0x35   : > { %s1411_s21 = sshll.u32 %s400_s28, 2  ;;  %s415_s12 = sand.u32 1, %s2074_s24  }
  0x36   : > { %2502 = sst [smem:[#allocation25_spill]] %s2253_s10  ;;  %s402_s30 = scalar_lea.hbm %s2459_s0, %s1411_s21 }
  0x37   : > { %s403_s4 = sshll.u32 %s402_s30, 4  ;;  %s392_s14 = scalar_lea.sflag [#allocation3], %s391_s29  ;;  %s404_s4 = int_to_ptr.hbm [resolvable:$true] %s403_s4 }
  0x38   : > { %s2503_s17 = smov 4   ;;  %s2504_s26 = smov 64  }
  0x39   : > { %1707 = dma.hbm_to_vmem [thread:$0]  (!%p2248_p9), %s404_s4, 128, %s406_s11, %s392_s14, %s2504_s26, %s2504_s26, %s2503_s17  }
  0x3a   : > { %s1678_s9 = smul.u32 3, %s2070_s23  ;;  %s418_s15 = scalar_lea.vmem [#allocation5], %s391_s29 }
  0x3b   : > { %s427_s10 = sshll.u32 %s418_s15, 4  ;;  %s416_s21 = scalar_lea.sflag [#allocation6], %s415_s12  ;;  %s428_s10 = int_to_ptr.vmem [resolvable:$true] %s427_s10 }
  0x3c   : > { %s422_s6 = sadd.s32 %s2066_s22, %s1678_s9  ;;  %436 = sbr.rel (%p2207_p7) target bundleno = 551 (0x227), region = 60 }
  0x3d   : > { %s423_s3 = scalar_lea.hbm %s2460_s1, %s422_s6  ;;  %s2274_s11 = sand.u32 (!%p2207_p7), 1, %s2050_s18  }
  0x3e   : > { %s425_s5 = sshll.u32 %s423_s3, 4  ;;  %s1413_s9 = sshll.u32 (!%p2207_p7), %s2274_s11, 3  ;;  %s426_s5 = int_to_ptr.hbm [resolvable:$true] %s425_s5 }
  0x3f   : > { %1710 = dma.hbm_to_vmem [thread:$0]  (!%p2248_p9), %s426_s5, 16, %s428_s10, %s416_s21  }
  0x40   : > { %s439_s26 = scalar_lea.sflag (!%p2207_p7), [#allocation3], %s2274_s11  ;;  %s2278_s29 = scalar_lea.vmem (!%p2207_p7), [#allocation2], %s1413_s9 }
  0x41   : > { %2021 = dma.done.wait (%p2194_p3), %s439_s26, 128  }
  0x42   : > { %2023 = vsyncadd (%p2194_p3), %s439_s26, 4294967168  ;;  %s448_s7 = sand.u32 1, %s2186_s25   ;;  %s451_s13 = scalar_lea.vmem [#allocation5], %s2274_s11 }
  0x43   : > { %s449_s10 = scalar_lea.sflag [#allocation6], %s448_s7 }
  0x44   : > { %2025 = dma.done.wait (%p2194_p3), %s449_s10, 16  }
  0x45   : > { %2027 = vsyncadd (%p2194_p3), %s449_s10, 4294967280 }
  0x46   : > { %2029 = dma.done.wait (%p70_p1), [#allocation6], 3072  }
  0x47   : > { %2031 = vsyncadd (%p70_p1), [#allocation6], 4294964224 }
  0x48   : > { %2033 = dma.done.wait (%p70_p1), [#allocation9], 1024  }
  0x49   : > { %2035 = vsyncadd (%p70_p1), [#allocation9], 4294966272  ;;  %v1634_v0 = vld [vmem:[%s2467_s8 + $0x38] sm:$0xff]  ;;  %v1633_v2 = vld [vmem:[%s2467_s8 + $0x30] sm:$0xff]  ;;  %v759_v40 = vlaneseq  ;;  %s2505_s7 = sld [smem:[#allocation31_spill]]  ;;  %s1416_s12 = sshll.u32 %s2274_s11, 4 }
  0x4a   : > { %v1642_v1 = vld [vmem:[%s2461_s2 + $0x38] sm:$0xff]  ;;  %590 = vmatpush.bf16.msra.mxu0 %v1634_v0  ;;  %v1641_v3 = vld [vmem:[%s2461_s2 + $0x30] sm:$0xff]  ;;  %v1632_v4 = vld [vmem:[%s2467_s8 + $0x28] sm:$0xff]  ;;  %s2506_s4 = sld [smem:[#allocation26_spill]]  ;;  %p773_p3 = scmp.gt.s32.totalorder %s2058_s20, 0  ;;  %v2080_v63 = vmov 1  }
  0x4b   : > { %722 = vmatpush.bf16.msra.mxu1 %v1642_v1  ;;  %742 = vmatpush.bf16.msra.mxu2 %v1642_v1  ;;  %v1640_v5 = vld [vmem:[%s2461_s2 + $0x28] sm:$0xff]  ;;  %v1631_v8 = vld [vmem:[%s2467_s8 + $0x20] sm:$0xff]  ;;  %v1630_v11 = vld [vmem:[%s2467_s8 + $0x18] sm:$0xff]  ;;  %v760_v43 = vshrl.u32 %v759_v40, 7  ;;  %s2361_s27 = scalar_lea.vmem [#allocation10], %s1416_s12  ;;  %v2081_v0 = vmov 0  }
  0x4c   : > { %v1660_v6 = vld [vmem:[#allocation7 + $0x78] sm:$0xff]  ;;  %v1659_v7 = vld [vmem:[#allocation7 + $0x70] sm:$0xff]  ;;  %v1658_v10 = vld [vmem:[#allocation7 + $0x68] sm:$0xff]  ;;  %1797 = vset.pattern.permute.xlu2 %v2080_v63  ;;  %1799 = vset.pattern.permute.xlu0 %v2081_v0  ;;  %s774_s17 = scalar_select %p773_p3, 1, 0  ;;  %vm801_vm7 = vcmask 1040384  }
  0x4d   : > { %900 = vmatpush.bf16.msra.mxu3 %v1660_v6  ;;  %v1639_v9 = vld [vmem:[%s2461_s2 + $0x20] sm:$0xff]  ;;  %v1638_v12 = vld [vmem:[%s2461_s2 + $0x18] sm:$0xff]  ;;  %v1629_v13 = vld [vmem:[%s2467_s8 + $0x10] sm:$0xff]  ;;  %v761_v54 = vadd.s32 8, %v760_v43  ;;  %1798 = vset.pattern.permute.xlu1 %v2081_v0  ;;  %vm802_vm8 = vsmask.f32 256 }
  0x4e   : > { %591 = vmatpush.bf16.msra.mxu0 %v1633_v2  ;;  %v1637_v14 = vld [vmem:[%s2461_s2 + $0x10] sm:$0xff]  ;;  %v1628_v15 = vld [vmem:[%s2467_s8 + $0x8] sm:$0xff]  ;;  %v1627_v17 = vld [vmem:[%s2467_s8] sm:$0xff]  ;;  %vm814_vm9 = vcmask 1047552   ;;  %vm815_vm10 = vsmask.f32 7424 }
  0x4f   : > { %723 = vmatpush.bf16.msra.mxu1 %v1641_v3  ;;  %743 = vmatpush.bf16.msra.mxu2 %v1641_v3  ;;  %v1636_v16 = vld [vmem:[%s2461_s2 + $0x8] sm:$0xff]  ;;  %v1635_v18 = vld [vmem:[%s2461_s2] sm:$0xff]  ;;  %v1657_v25 = vld [vmem:[#allocation7 + $0x60] sm:$0xff]  ;;  %s2082_s15 = smov 127   ;;  %s2507_s16 = sld [smem:[#allocation28_spill]] }
  0x50   : > { %v1652_v19 = vld [vmem:[#allocation7 + $0x38] sm:$0xff]  ;;  %v515_v22 = vld [vmem:[%s451_s13] sm:$0x1]  ;;  %v1651_v23 = vld [vmem:[#allocation7 + $0x30] sm:$0xff]  ;;  %s2508_s28 = sld [smem:[#allocation20_spill]]  ;;  %s1215_s21 = sshll.u32 %s2361_s27, 4  ;;  %s1216_s21 = int_to_ptr.vmem [resolvable:$true] %s1215_s21 }
  0x51   : > { %901 = vmatpush.bf16.msra.mxu3 %v1659_v7  ;;  %v1668_v20 = vld [vmem:[#allocation7 + $0xb8] sm:$0xff]  ;;  %v1667_v24 = vld [vmem:[#allocation7 + $0xb0] sm:$0xff]  ;;  %v1650_v26 = vld [vmem:[#allocation7 + $0x28] sm:$0xff]  ;;  %s2510_s10 = sld [smem:[#allocation32_spill]] }
  0x52   : > { %592 = vmatpush.bf16.msra.mxu0 %v1632_v4  ;;  %v1626_v21 = vld [vmem:[%s2278_s29] sm:$0xff]  ;;  %v1649_v29 = vld [vmem:[#allocation7 + $0x20] sm:$0xff]  ;;  %s1488_s29 = sshll.u32 %s2058_s20, 4  ;;  %vm803_vm12 = vmand %vm801_vm7, %vm802_vm8 }
  0x53   : > { %724 = vmatpush.bf16.msra.mxu1 %v1640_v5  ;;  %744 = vmatpush.bf16.msra.mxu2 %v1640_v5  ;;  %v1666_v27 = vld [vmem:[#allocation7 + $0xa8] sm:$0xff]  ;;  %v1656_v28 = vld [vmem:[#allocation7 + $0x58] sm:$0xff]  ;;  %v1665_v30 = vld [vmem:[#allocation7 + $0xa0] sm:$0xff]  ;;  %v762_v44 = vstv %s1488_s29  ;;  %s1644_s13 = sadd.s32 16, %s1488_s29  ;;  %s1620_s29 = sshll.u32 %s2058_s20, 1 }
  0x54   : > { %v1655_v31 = vld [vmem:[#allocation7 + $0x50] sm:$0xff]  ;;  %v1648_v32 = vld [vmem:[#allocation7 + $0x18] sm:$0xff]  ;;  %v1654_v34 = vld [vmem:[#allocation7 + $0x48] sm:$0xff]  ;;  %v763_v47 = vadd.s32 %v762_v44, %v760_v43  ;;  %p780_p1 = scmp.lt.s32.totalorder %s1644_s13, 40  ;;  %v764_v59 = vadd.s32 %v762_v44, %v761_v54 }
  0x55   : > { %902 = vmatpush.bf16.msra.mxu3 %v1658_v10  ;;  %v1664_v33 = vld [vmem:[#allocation7 + $0x98] sm:$0xff]  ;;  %v1647_v35 = vld [vmem:[#allocation7 + $0x10] sm:$0xff]  ;;  %v1653_v37 = vld [vmem:[#allocation7 + $0x40] sm:$0xff] }
  0x56   : > { %593 = vmatpush.bf16.msra.mxu0 %v1631_v8  ;;  %v1663_v36 = vld [vmem:[#allocation7 + $0x90] sm:$0xff]  ;;  %v1646_v38 = vld [vmem:[#allocation7 + $0x8] sm:$0xff]  ;;  %v1645_v41 = vld [vmem:[#allocation7] sm:$0xff]  ;;  %vm765_vm0 = vcmp.lt.s32.totalorder %v763_v47, 40  ;;  %s781_s14 = scalar_select %p780_p1, 1, 0 }
  0x57   : > { %725 = vmatpush.bf16.msra.mxu1 %v1639_v9  ;;  %745 = vmatpush.bf16.msra.mxu2 %v1639_v9  ;;  %v1662_v39 = vld [vmem:[#allocation7 + $0x88] sm:$0xff]  ;;  %v1661_v42 = vld [vmem:[#allocation7 + $0x80] sm:$0xff]  ;;  %vm766_vm5 = vcmp.lt.s32.totalorder %v764_v59, 40  ;;  %vm816_vm14 = vmand %vm814_vm9, %vm815_vm10  ;;  %s1679_s5 = smul.u32 6, %s2508_s28  ;;  %s1952_s6 = scalar_lea.hbm %s2510_s10, 96 }
  0x58   : > { %v1800_v45 = vld [vmem:[%s2505_s7] ss:$0 sm:$0xff]  ;;  %v782_v58 = vstv %s781_s14  ;;  %v1673_v59 = vld [vmem:[#allocation8 + $0x20] sm:$0xff]  ;;  %s1196_s14 = scalar_lea.sflag [#allocation4], %s2274_s11 }
  0x59   : > { %903 = vmatpush.bf16.msra.mxu3 %v1657_v25  ;;  %v1801_v46 = vld [vmem:[%s2506_s4] ss:$0 sm:$0xff]  ;;  %vm783_vm3 = vcmp.eq.s32.totalorder %v782_v58, 1  ;;  %v1669_v63 = vld [vmem:[#allocation8] sm:$0xff]  ;;  %s2378_s13 = sadd.s32 %s1679_s5, %s1620_s29 }
  0x5a   : > { %594 = vmatpush.bf16.msra.mxu0 %v1630_v11  ;;  %v1674_v58 = vld [vmem:[#allocation8 + $0x28] sm:$0xff]  ;;  %s1621_s9 = sshll.u32 %s2378_s13, 3 }
  0x5b   : > { %726 = vmatpush.bf16.msra.mxu1 %v1638_v12  ;;  %746 = vmatpush.bf16.msra.mxu2 %v1638_v12  ;;  %v775_v12 = vstv %s774_s17  ;;  %s1214_s30 = scalar_lea.hbm %s2510_s10, %s1621_s9 }
  0x5c   : > { %vm776_vm6 = vcmp.eq.s32.totalorder %v775_v12, 1  ;;  %s1217_s4 = sshll.u32 %s1214_s30, 4  ;;  %s1218_s4 = int_to_ptr.hbm [resolvable:$true] %s1217_s4 }
  0x5d   : > { %904 = vmatpush.bf16.msra.mxu3 %v1656_v28  ;;  %s1946_s17 = sshra.s32 %s1218_s4, 4  ;;  %s1947_s17 = int_to_ptr.hbm [resolvable:$true] %s1946_s17 }
  0x5e   : > { %595 = vmatpush.bf16.msra.mxu0 %v1629_v13  ;;  %p1953_p12 = scmp.lt.s32.totalorder %s1947_s17, %s2510_s10 }
  0x5f   : > { %727 = vmatpush.bf16.msra.mxu1 %v1637_v14  ;;  %747 = vmatpush.bf16.msra.mxu2 %v1637_v14 }
  0x61   : > { %905 = vmatpush.bf16.msra.mxu3 %v1655_v31 }
  0x62   : > { %596 = vmatpush.bf16.msra.mxu0 %v1628_v15 }
  0x63   : > { %728 = vmatpush.bf16.msra.mxu1 %v1636_v16  ;;  %748 = vmatpush.bf16.msra.mxu2 %v1636_v16 }
  0x65   : > { %906 = vmatpush.bf16.msra.mxu3 %v1654_v34 }
  0x66   : > { %597 = vmatpush.bf16.msra.mxu0 %v1627_v17 }
  0x67   : > { %729 = vmatpush.bf16.msra.mxu1 %v1635_v18  ;;  %749 = vmatpush.bf16.msra.mxu2 %v1635_v18 }
  0x69   : > { %598 = vmatmul.bf16.vlgmr.msra.gmra.mxu0 %v1626_v21  ;;  %907 = vmatpush.bf16.msra.mxu3 %v1653_v37 }
  0x6a   : > { %962 = vmatpush.bf16.msrb.mxu0 %v1652_v19  ;;  %730 = vmatmul.bf16.vlgmr.msra.gmra.mxu1 %v1626_v21 }
  0x6b   : > { %1041 = vmatpush.bf16.msrb.mxu1 %v1668_v20  ;;  %750 = vmatmul.bf16.vlgmr.msra.gmra.mxu2 %v515_v22 }
  0x6e   : > { %963 = vmatpush.bf16.msrb.mxu0 %v1651_v23 }
  0x6f   : > { %1042 = vmatpush.bf16.msrb.mxu1 %v1667_v24 }
  0x72   : > { %964 = vmatpush.bf16.msrb.mxu0 %v1650_v26 }
  0x73   : > { %1043 = vmatpush.bf16.msrb.mxu1 %v1666_v27 }
  0x76   : > { %965 = vmatpush.bf16.msrb.mxu0 %v1649_v29 }
  0x77   : > { %1044 = vmatpush.bf16.msrb.mxu1 %v1665_v30 }
  0x7a   : > { %966 = vmatpush.bf16.msrb.mxu0 %v1648_v32 }
  0x7b   : > { %1045 = vmatpush.bf16.msrb.mxu1 %v1664_v33 }
  0x7e   : > { %967 = vmatpush.bf16.msrb.mxu0 %v1647_v35 }
  0x7f   : > { %1046 = vmatpush.bf16.msrb.mxu1 %v1663_v36 }
  0x82   : > { %968 = vmatpush.bf16.msrb.mxu0 %v1646_v38 }
  0x83   : > { %1047 = vmatpush.bf16.msrb.mxu1 %v1662_v39 }
  0x86   : > { %969 = vmatpush.bf16.msrb.mxu0 %v1645_v41 }
  0x87   : > { %1048 = vmatpush.bf16.msrb.mxu1 %v1661_v42 }
  0xe6   : > { %v599_v48 = vpop.f32.mrf.mxu0 }
  0xe7   : > { %v731_v49 = vpop.f32.mrf.mxu1  ;;  %v600_v50 = vadd.f32 %v1800_v45, %v599_v48 }
  0xe8   : > { %v732_v51 = vadd.f32 %v1801_v46, %v731_v49 }
  0xe9   : > { %v1454_v52 = vmul.f32 -1.442695, %v600_v50 }
  0xea   : > { %vm736_vm1 = vcmp.gt.f32.partialorder %v732_v51, 0.0  ;;  %v738_v53 = vmul.f32 0.2, %v732_v51 }
  0xeb   : > { %1804 = vpow2.f32 %v1454_v52 }
  0xec   : > { %v740_v55 = vsel %vm736_vm1, %v732_v51, %v738_v53 }
  0xed   : > { %v771_v56 = vsel %vm765_vm0, %v740_v55, 0.0 }
  0xee   : > { %1189 = vst [vmem:[%s2361_s27] sm:$0xff] %v771_v56  ;;  %v751_v57 = vpop.f32.mrf.mxu2  ;;  %v601_v61 = vpop.f32.mrf.mxu0  ;;  %v785_v11 = vpack.c.bf16 %v771_v56, %v771_v56  ;;  %v1676_v56 = vld [vmem:[#allocation8 + $0x38] sm:$0xff] }
  0xef   : > { %v752_v60 = vadd.f32 %v1801_v46, %v751_v57  ;;  %v733_v62 = vpop.f32.mrf.mxu1  ;;  %v602_v1 = vadd.f32 %v1800_v45, %v601_v61  ;;  %1138 = vmatpush.bf16.msrb.mxu2 %v1676_v56  ;;  %v1675_v57 = vld [vmem:[#allocation8 + $0x30] sm:$0xff] }
  0xf0   : > { %v734_v2 = vadd.f32 %v1801_v46, %v733_v62  ;;  %v790_v18 = vunpack.c.l.b16 %v785_v11  ;;  %v1671_v61 = vld [vmem:[#allocation8 + $0x10] sm:$0xff]  ;;  %v1670_v62 = vld [vmem:[#allocation8 + $0x8] sm:$0xff] }
  0xf1   : > { %vm755_vm2 = vcmp.gt.f32.partialorder %v752_v60, 0.0  ;;  %v756_v3 = vmul.f32 0.2, %v752_v60  ;;  %v1805_v4 = vpop.eup %1804  ;;  %v1455_v5 = vmul.f32 -1.442695, %v602_v1 }
  0xf2   : > { %vm737_vm4 = vcmp.gt.f32.partialorder %v734_v2, 0.0  ;;  %v739_v6 = vmul.f32 0.2, %v734_v2  ;;  %v610_v7 = vadd.f32 1.0, %v1805_v4  ;;  %v1802_v11 = vld [vmem:[%s2507_s16] ss:$0 sm:$0xff] }
  0xf3   : > { %v757_v8 = vsel %vm755_vm2, %v752_v60, %v756_v3  ;;  %1806 = vpow2.f32 %v1455_v5  ;;  %1139 = vmatpush.bf16.msrb.mxu2 %v1675_v57  ;;  %v1672_v60 = vld [vmem:[#allocation8 + $0x18] sm:$0xff] }
  0xf4   : > { %v784_v9 = vsel %vm783_vm3, %v757_v8, 0.0  ;;  %v741_v10 = vsel %vm737_vm4, %v734_v2, %v739_v6  ;;  %1808 = vrcp.f32 %v610_v7  ;;  %v777_v24 = vsel %vm776_vm6, %v757_v8, 0.0 }
  0xf5   : > { %v805_v13 = vpack.c.bf16 %v784_v9, %v784_v9  ;;  %v772_v14 = vsel %vm766_vm5, %v741_v10, 0.0  ;;  %vm617_vm11 = vweird.f32 %v610_v7  ;;  %v621_v30 = vand.u32 2147483647, %v610_v7 }
  0xf6   : > { %1190 = vst [vmem:[%s2361_s27 + $0x8] sm:$0xff] %v772_v14  ;;  %v753_v15 = vpop.f32.mrf.mxu2  ;;  %v786_v16 = vpack.c.bf16 %v772_v14, %v772_v14  ;;  %v623_v31 = vand.u32 2147483648, %v610_v7  ;;  %v787_v35 = vpack.c.bf16 %v777_v24, %v777_v24 }
  0xf7   : > { %v810_v17 = vunpack.c.l.b16 %v805_v13  ;;  %vm622_vm0 = vcmp.eq.f32.partialorder %v621_v30, 8.507059e+37  ;;  %1140 = vmatpush.bf16.msrb.mxu2 %v1674_v58 }
  0xf8   : > { %v791_v19 = vunpack.c.l.b16 %v786_v16  ;;  %v624_v39 = vor.u32 1.1754944e-38, %v623_v31 }
  0xf9   : > { %v811_v20 = vpack.c.b16 %v810_v17, %v810_v17  ;;  %v1807_v21 = vpop.eup %1806 }
  0xfa   : > { %v792_v22 = vpack.c.b16 %v791_v19, %v790_v18  ;;  %v1809_v23 = vpop.eup %1808  ;;  %v611_v25 = vadd.f32 1.0, %v1807_v21 }
  0xfb   : > { %v613_v28 = vmul.f32 %v1809_v23, %v610_v7  ;;  %v812_v29 = vrot.slane %v811_v20, 1  ;;  %vm618_vm13 = vweird.f32 %v1809_v23  ;;  %1141 = vmatpush.bf16.msrb.mxu2 %v1673_v59 }
  0xfc   : > { %v794_v26 = vshrl.u32 %v792_v22, 16  ;;  %908 = vmatmul.bf16.vlgmr.msra.gmra.mxu3 %v792_v22  ;;  %v797_v27 = vshll.u32 %v792_v22, 16  ;;  %1810 = vrcp.f32 %v611_v25  ;;  %vm619_vm15 = vmor %vm617_vm11, %vm618_vm13  ;;  %v638_v48 = vand.u32 2147483648, %v611_v25 }
  0xfd   : > { %v614_v34 = vsub.f32 1.0, %v613_v28  ;;  %vm632_vm1 = vweird.f32 %v611_v25  ;;  %v636_v50 = vand.u32 2147483647, %v611_v25 }
  0xfe   : > { %v796_v32 = vrot.slane %v794_v26, 7  ;;  %v806_v33 = vrot.slane %v797_v27, 1  ;;  %v639_v52 = vor.u32 1.1754944e-38, %v638_v48 }
  0xff   : > { %v615_v38 = vmul.f32 %v1809_v23, %v614_v34  ;;  %vm637_vm4 = vcmp.eq.f32.partialorder %v636_v50, 8.507059e+37  ;;  %1142 = vmatpush.bf16.msrb.mxu2 %v1672_v60 }
 0x100   : > { %v799_v36 = vor.u32 %v797_v27, %v796_v32  ;;  %v807_v37 = vor.u32 %v806_v33, %v794_v26 }
 0x101   : > { %v616_v43 = vadd.f32 %v1809_v23, %v615_v38 }
 0x102   : > { %v804_v41 = vsel %vm803_vm12, %v787_v35, %v799_v36  ;;  %v817_v42 = vsel %vm816_vm14, %v807_v37, %v812_v29  ;;  %v1811_v44 = vpop.eup %1810 }
 0x103   : > { %970 = vmatmul.bf16.vlgmr.msrb.gmra.mxu0 %v804_v41  ;;  %1049 = vmatmul.bf16.vlgmr.msrb.gmra.mxu1 %v817_v42  ;;  %v620_v45 = vsel %vm619_vm15, %v1809_v23, %v616_v43  ;;  %v628_v46 = vmul.f32 %v1811_v44, %v611_v25  ;;  %vm633_vm2 = vweird.f32 %v1811_v44 }
 0x104   : > { %v625_v47 = vsel %vm622_vm0, %v624_v39, %v620_v45  ;;  %vm634_vm3 = vmor %vm632_vm1, %vm633_vm2  ;;  %1143 = vmatpush.bf16.msrb.mxu2 %v1671_v61 }
 0x105   : > { %644 = vrot.lane.b32.xlu0 %v625_v47, %s2082_s15  ;;  %v629_v49 = vsub.f32 1.0, %v628_v46  ;;  %1170 = vperm.xlu2 %1797, %v625_v47  }
 0x107   : > { %v630_v51 = vmul.f32 %v1811_v44, %v629_v49 }
 0x108   : > { %1144 = vmatpush.bf16.msrb.mxu2 %v1670_v62 }
 0x109   : > { %v631_v53 = vadd.f32 %v1811_v44, %v630_v51 }
 0x10b   : > { %v635_v54 = vsel %vm634_vm3, %v1811_v44, %v631_v53 }
 0x10c   : > { %v640_v55 = vsel %vm637_vm4, %v639_v52, %v635_v54  ;;  %1145 = vmatpush.bf16.msrb.mxu2 %v1669_v63 }
 0x10d   : > { %646 = vrot.lane.b32.xlu0 %v640_v55, %s2082_s15  ;;  %1174 = vperm.xlu2 %1797, %v640_v55   ;;  %s1948_s15 = scalar_lea.hbm %s1947_s17, 16 }
 0x10e   : > { %p1949_p7 = scmp.ne.s32.totalorder %s1947_s17, %s1948_s15  ;;  %p1954_p13 = scmp.lt.s32.totalorder %s1952_s6, %s1948_s15 }
 0x110   : > { %p1950_p10 = pnand %p1949_p7, %p2236_p2  ;;  %p1955_p0 = por %p1954_p13, %p1953_p12 }
 0x112   : > { %p1951_p11 = pneg %p1950_p10 }
 0x114   : > { %p1956_p4 = pnand %p1955_p0, %p1951_p11 }
 0x115   : > { %1180 = vperm.xlu0 %1799, %v625_v47  }
 0x177   : > { %v645_v0 = vpop.permute.xlu0 %644 }
 0x178   : > { %v650_v1 = vadd.f32 %v645_v0, %v625_v47 }
 0x17a   : > { %v652_v2 = vmul.f32 0.5, %v650_v1 }
 0x17c   : > { %1159 = vperm.xlu1 %1798, %v652_v2  }
 0x17f   : > { %v909_v3 = vpop.f32.mrf.mxu3  ;;  %v647_v7 = vpop.permute.xlu0 %646 }
 0x180   : > { %v971_v4 = vpop.f32.mrf.mxu0  ;;  %v1050_v5 = vpop.f32.mrf.mxu1  ;;  %v651_v8 = vadd.f32 %v647_v7, %v640_v55 }
 0x181   : > { %v972_v6 = vadd.f32 %v971_v4, %v909_v3 }
 0x182   : > { %v653_v9 = vmul.f32 0.5, %v651_v8 }
 0x183   : > { %v1055_v10 = vadd.f32 %v1050_v5, %v972_v6 }
 0x184   : > { %1164 = vperm.xlu1 %1798, %v653_v9  }
 0x185   : > { %v1061_v14 = vadd.f32 %v1802_v11, %v1055_v10 }
 0x187   : > { %v911_v12 = vpop.f32.mrf.mxu3  ;;  %v1065_v18 = vmul.f32 0.2, %v1061_v14  ;;  %vm1063_vm5 = vcmp.gt.f32.partialorder %v1061_v14, 0.0 }
 0x188   : > { %v973_v13 = vpop.f32.mrf.mxu0  ;;  %v1052_v16 = vpop.f32.mrf.mxu1 }
 0x189   : > { %v974_v15 = vadd.f32 %v973_v13, %v911_v12  ;;  %v1067_v21 = vsel %vm1063_vm5, %v1061_v14, %v1065_v18 }
 0x18b   : > { %v1056_v17 = vadd.f32 %v1052_v16, %v974_v15 }
 0x18c   : > { %1184 = vperm.xlu1 %1798, %v640_v55  }
 0x18d   : > { %v1062_v19 = vadd.f32 %v1802_v11, %v1056_v17 }
 0x18f   : > { %vm1064_vm6 = vcmp.gt.f32.partialorder %v1062_v19, 0.0  ;;  %v1066_v20 = vmul.f32 0.2, %v1062_v19 }
 0x191   : > { %v1068_v22 = vsel %vm1064_vm6, %v1062_v19, %v1066_v20 }
 0x192   : > { %v1069_v23 = vpack.c.bf16 %v1068_v22, %v1067_v21 }
 0x194   : > { %1146 = vmatmul.bf16.vlgmr.msrb.gmra.mxu2 %v1069_v23 }
 0x195   : > { %1959 = shalt.err (!%p1956_p4)
}
 0x196   : > { %s2083_s28 = smov 128   ;;  %s2084_s5 = smov 8   ;;  %v1153_v25 = vand.u32 127, %v759_v40  ;;  %v1171_v29 = vpop.permute.xlu2 %1170  ;;  %v1181_v32 = vpop.permute.xlu0 %1180 }
 0x197   : > { %1693 = dma.vmem_to_hbm [thread:$0]  (%p2236_p2), %s1216_s21, 256, %s1218_s4, %s1196_s14, %s2083_s28, %s2083_s28, %s2084_s5  }
 0x198   : > { %vm1156_vm7 = vcmp.eq.s32.totalorder %v1153_v25, 127  ;;  %vm1155_vm8 = vcmp.eq.s32.totalorder %v1153_v25, 126  ;;  %s2511_s7 = sld [smem:[#allocation30_spill]]  ;;  %vm1154_vm9 = vcmp.eq.s32.totalorder %v1153_v25, 125  ;;  %s509_s21 = scalar_lea.vmem [#allocation11], %s1416_s12 }
 0x199   : > { %s2512_s14 = sld [smem:[#allocation33_spill]]  ;;  %s1234_s15 = sshll.u32 %s509_s21, 4  ;;  %s1235_s15 = int_to_ptr.vmem [resolvable:$true] %s1234_s15 }
 0x19a   : > { %s1201_s12 = scalar_lea.sflag [#allocation12], %s2274_s11 }
 0x19e   : > { %v1803_v28 = vld [vmem:[%s2511_s7] ss:$0 sm:$0xff]  ;;  %v1175_v37 = vpop.permute.xlu2 %1174 }
 0x19f   : > { %s1233_s17 = scalar_lea.hbm %s2512_s14, %s1621_s9  ;;  %s1980_s25 = scalar_lea.hbm %s2512_s14, 96 }
 0x1a0   : > { %s1236_s20 = sshll.u32 %s1233_s17, 4  ;;  %s1237_s20 = int_to_ptr.hbm [resolvable:$true] %s1236_s20 }
 0x1a1   : > { %s1974_s13 = sshra.s32 %s1237_s20, 4  ;;  %s1975_s13 = int_to_ptr.hbm [resolvable:$true] %s1974_s13 }
 0x1a2   : > { %s1976_s9 = scalar_lea.hbm %s1975_s13, 16  ;;  %p1981_p1 = scmp.lt.s32.totalorder %s1975_s13, %s2512_s14 }
 0x1a3   : > { %p1977_p6 = scmp.ne.s32.totalorder %s1975_s13, %s1976_s9  ;;  %p1982_p3 = scmp.lt.s32.totalorder %s1980_s25, %s1976_s9 }
 0x1a5   : > { %p1978_p8 = pnand %p1977_p6, %p2236_p2  ;;  %p1983_p7 = por %p1982_p3, %p1981_p1 }
 0x1a7   : > { %p1979_p9 = pneg %p1978_p8 }
 0x1a9   : > { %p1984_p10 = pnand %p1983_p7, %p1979_p9 }
 0x1ee   : > { %v1160_v24 = vpop.permute.xlu1 %1159 }
 0x1ef   : > { %v1167_v26 = vsel %vm1156_vm7, %v1160_v24, 0.0 }
 0x1f0   : > { %v1177_v30 = vsel %vm1155_vm8, %v1171_v29, %v1167_v26 }
 0x1f1   : > { %v1187_v34 = vsel %vm1154_vm9, %v1181_v32, %v1177_v30 }
 0x1f6   : > { %v1165_v27 = vpop.permute.xlu1 %1164 }
 0x1f7   : > { %v1168_v35 = vsel %vm1156_vm7, %v1165_v27, 0.0 }
 0x1f8   : > { %v1178_v39 = vsel %vm1155_vm8, %v1175_v37, %v1168_v35 }
 0x1fe   : > { %v1185_v36 = vpop.permute.xlu1 %1184 }
 0x1ff   : > { %v1188_v42 = vsel %vm1154_vm9, %v1185_v36, %v1178_v39 }
 0x217   : > { %v1147_v31 = vpop.f32.mrf.mxu2 }
 0x218   : > { %v1148_v33 = vadd.f32 %v1803_v28, %v1147_v31 }
 0x21a   : > { %v1191_v40 = vadd.f32 %v1187_v34, %v1148_v33 }
 0x21c   : > { %1193 = vst [vmem:[%s509_s21] sm:$0xff] %v1191_v40 }
 0x21f   : > { %v1149_v38 = vpop.f32.mrf.mxu2 }
 0x220   : > { %v1150_v41 = vadd.f32 %v1803_v28, %v1149_v38 }
 0x222   : > { %v1192_v43 = vadd.f32 %v1188_v42, %v1150_v41 }
 0x224   : > { %1194 = vst [vmem:[%s509_s21 + $0x8] sm:$0xff] %v1192_v43 }
 0x225   : > { %1987 = shalt.err (!%p1984_p10)
}
 0x226   : > { %1694 = dma.vmem_to_hbm [thread:$0]  (%p2236_p2), %s1235_s15, 256, %s1237_s20, %s1201_s12, %s2083_s28, %s2083_s28, %s2084_s5  }
 0x227 PF: > { %s2513_s11 = sld [smem:[#allocation19_spill]]  ;;  %p1723_p11 = scmp.ge.s32.totalorder %s2074_s24, 2 }
 0x229   : > { %p1712_p12 = pnand %p1723_p11, %p2199_p5 }
 0x22b   : > { %p1713_p13 = pneg %p1712_p12 }
 0x22d   : > { %s1251_s7 = sand.u32 1, %s2513_s11  }
 0x22e   : > { %s1252_s21 = scalar_lea.sflag [#allocation4], %s1251_s7 }
 0x22f   : > { %2037 = dma.done.wait (%p1713_p13), %s1252_s21, 256  }
 0x230   : > { %2039 = vsyncadd (%p1713_p13), %s1252_s21, 4294967040  ;;  %s1262_s30 = scalar_lea.sflag [#allocation12], %s1251_s7 }
 0x231   : > { %2041 = dma.done.wait (%p1713_p13), %s1262_s30, 256  }
 0x232   : > { %2043 = vsyncadd (%p1713_p13), %s1262_s30, 4294967040  ;;  %s35_s24 = sadd.s32 1, %s2074_s24   ;;  %s2515_s3 = sld [smem:[#allocation25_spill]] }
 0x233   : > { %p32_p0 = scmp.ge.s32.totalorder %s35_s24, 8   ;;  %s2516_s28 = sld [smem:[#allocation22_spill]] }
 0x234   : > { %s2517_s5 = sld [smem:[#allocation24_spill]]  ;;  %s2518_s17 = smov %s2050_s18 }
 0x235   : > { %s2519_s18 = smov %s2054_s19  ;;  %s2521_s20 = smov %s2066_s22 }
 0x236   : > { %s2522_s21 = smov %s2070_s23  ;;  %34 = sbr.rel (!%p32_p0) target bundleno = 21 (0x15), region = 145 }
 0x238   : > { %s2520_s19 = smov %s2515_s3 }
 0x239   : > { %s2523_s22 = smov %s2516_s28 }
 0x23a   : > { %s2524_s23 = smov %s2517_s5 }
 0x23b   :  { %1268 = vsyncpa [#allocation3], 1 }
 0x23c   :  { %1270 = vsyncpa [#allocation3 + $0x1], 1 }
 0x23d   :  { %1271 = vsyncpa [#allocation6], 1 }
 0x23e   :  { %1273 = vsyncpa [#allocation6 + $0x1], 1 }
 0x23f   :  { %1274 = vsyncpa [#allocation9], 1 }
 0x240   :  { %1275 = vsyncpa [#allocation4], 1 }
 0x241   :  { %1277 = vsyncpa [#allocation4 + $0x1], 1 }
 0x242   :  { %1278 = vsyncpa [#allocation12], 1 }
 0x243   :  { %1280 = vsyncpa [#allocation12 + $0x1], 1 }

</bundles_post_ra>
